<compile_context>
chip_gen: v6e
topology: v6e:2x2x1
jax: 0.10.0
libtpu: 0.0.40
codegen_flags: <defaults>
</compile_context>

<pallas_src>
import functools

import jax
import jax.numpy as jnp
from jax.experimental import pallas as pl
from jax.experimental.pallas import tpu as pltpu


def _mlp_kernel(x_ref, w1_ref, b1_ref, w2_ref, b2_ref, out_ref):
    # Layer 1: Linear (bf16 MXU, f32 accumulate) + bias + ReLU (f32, VPU).
    h = jnp.dot(x_ref[...], w1_ref[...], preferred_element_type=jnp.float32)
    h = jnp.maximum(h + b1_ref[...], 0.0)          # (TB, H) + (1, H) broadcast
    # Layer 2: downcast activation to the weight dtype for the MXU, f32 acc.
    o = jnp.dot(h.astype(w2_ref.dtype), w2_ref[...],
                preferred_element_type=jnp.float32)
    out_ref[...] = (o + b2_ref[...]).astype(out_ref.dtype)


def _round_up(n, m):
    return ((n + m - 1) // m) * m


@functools.partial(jax.jit, static_argnames=("block_b",))
def mlp_forward(x, w1, b1, w2, b2, *, block_b=128):
    """relu(x @ w1 + b1) @ w2 + b2.

    x:  (B, Cin)
    w1: (Cin, H),  b1: (H,)
    w2: (H, Cout), b2: (Cout,)
    Returns (B, Cout) float32.
    """
    B, Cin = x.shape
    H = w1.shape[1]
    O = w2.shape[1]

    # --- wrapper-side layout plumbing --------------------------------------
    in_dtype = jnp.bfloat16

    # Lane-dense output: pad Cout to a multiple of 128 (zero weights/bias in
    # the padded columns; sliced away at the end).
    O_pad = max(128, _round_up(O, 128))

    # Batch tile: multiple of 8 sublanes, capped at block_b; pad B so the
    # grid divides evenly.  TB<=128 keeps h (TB x H f32) tiny in vregs/VMEM
    # and is well within v7x's 32 MiB scoped VMEM even with double-buffering.
    TB = min(block_b, _round_up(B, 8))
    B_pad = _round_up(B, TB)

    x_p = jnp.pad(x, ((0, B_pad - B), (0, 0))).astype(in_dtype)
    w1_c = w1.astype(in_dtype)
    w2_p = jnp.pad(w2, ((0, 0), (0, O_pad - O))).astype(in_dtype)
    b1_2d = b1.reshape(1, H).astype(jnp.float32)
    b2_2d = jnp.pad(b2, (0, O_pad - O)).reshape(1, O_pad).astype(jnp.float32)

    out = pl.pallas_call(
        _mlp_kernel,
        out_shape=jax.ShapeDtypeStruct((B_pad, O_pad), jnp.float32),
        grid=(B_pad // TB,),
        in_specs=[
            # Activations stream over batch tiles ...
            pl.BlockSpec((TB, Cin), lambda i: (i, 0)),
            # ... weights / biases stay VMEM-resident (constant block index).
            pl.BlockSpec((Cin, H), lambda i: (0, 0)),
            pl.BlockSpec((1, H), lambda i: (0, 0)),
            pl.BlockSpec((H, O_pad), lambda i: (0, 0)),
            pl.BlockSpec((1, O_pad), lambda i: (0, 0)),
        ],
        out_specs=pl.BlockSpec((TB, O_pad), lambda i: (i, 0)),
        compiler_params=pltpu.CompilerParams(
            dimension_semantics=("parallel",)),
    )(x_p, w1_c, b1_2d, w2_p, b2_2d)

    return out[:B, :O]


def init_params(key, in_channels, hidden_channels, out_channels):
    # Deterministic init mimicking PyTorch nn.Linear default
    # (uniform in [-1/sqrt(fan_in), 1/sqrt(fan_in)]).
    k1, k2, k3, k4 = jax.random.split(key, 4)
    lim1 = 1.0 / jnp.sqrt(in_channels)
    lim2 = 1.0 / jnp.sqrt(hidden_channels)
    w1 = jax.random.uniform(k1, (in_channels, hidden_channels),
                            minval=-lim1, maxval=lim1, dtype=jnp.float32)
    b1 = jax.random.uniform(k2, (hidden_channels,),
                            minval=-lim1, maxval=lim1, dtype=jnp.float32)
    w2 = jax.random.uniform(k3, (hidden_channels, out_channels),
                            minval=-lim2, maxval=lim2, dtype=jnp.float32)
    b2 = jax.random.uniform(k4, (out_channels,),
                            minval=-lim2, maxval=lim2, dtype=jnp.float32)
    return w1, b1, w2, b2


if __name__ == "__main__":
    key = jax.random.PRNGKey(0)
    k_x, k_p = jax.random.split(key)

    batch = 8
    in_channels = 32
    hidden_channels = 128
    out_channels = 16

    x = jax.random.normal(k_x, (batch, in_channels), dtype=jnp.float32)
    w1, b1, w2, b2 = init_params(k_p, in_channels, hidden_channels, out_channels)

    out = mlp_forward(x, w1, b1, w2, b2)
    out = jax.block_until_ready(out)
    assert out.shape == (batch, out_channels)

    # Reference reproducing the kernel's bf16-input / f32-accumulate path.
    x_bf, w1_bf, w2_bf = (a.astype(jnp.bfloat16) for a in (x, w1, w2))
    h_ref = jnp.maximum(
        jnp.dot(x_bf, w1_bf, preferred_element_type=jnp.float32) + b1, 0.0)
    ref = jnp.dot(h_ref.astype(jnp.bfloat16), w2_bf,
                  preferred_element_type=jnp.float32) + b2
    assert jnp.allclose(out, ref, atol=2e-2, rtol=2e-2)

    # Loose check against the pure-f32 math (semantic sanity).
    ref_f32 = jnp.maximum(x @ w1 + b1, 0.0) @ w2 + b2
    assert jnp.allclose(out, ref_f32, atol=5e-2, rtol=5e-2)

    print("KERNEL_OK")
</pallas_src>

<mosaic_0001>
module attributes {stable_mosaic.version = 11 : i64} {
  func.func @_mlp_kernel(%arg0: i32, %arg1: memref<8x32xbf16, #tpu.memory_space<vmem>>, %arg2: memref<32x128xbf16, #tpu.memory_space<vmem>>, %arg3: memref<1x128xf32, #tpu.memory_space<vmem>>, %arg4: memref<128x128xbf16, #tpu.memory_space<vmem>>, %arg5: memref<1x128xf32, #tpu.memory_space<vmem>>, %arg6: memref<8x128xf32, #tpu.memory_space<vmem>>) attributes {dimension_semantics = [#tpu.dimension_semantics<parallel>], iteration_bounds = array<i64: 1>, scalar_prefetch = 0 : i64, scratch_operands = 0 : i64, tpu.core_type = #tpu.core_type<tc>, window_params = [{transform_indices = @transform_0, window_bounds = array<i64: 8, 32>}, {pipeline_mode = #tpu.pipeline_mode<synchronous>, transform_indices = @transform_1, window_bounds = array<i64: 32, 128>}, {pipeline_mode = #tpu.pipeline_mode<synchronous>, transform_indices = @transform_2, window_bounds = array<i64: 1, 128>}, {pipeline_mode = #tpu.pipeline_mode<synchronous>, transform_indices = @transform_3, window_bounds = array<i64: 128, 128>}, {pipeline_mode = #tpu.pipeline_mode<synchronous>, transform_indices = @transform_4, window_bounds = array<i64: 1, 128>}, {transform_indices = @transform_5, window_bounds = array<i64: 8, 128>}]} {
    %c0 = arith.constant 0 : index
    %c0_0 = arith.constant 0 : index
    %0 = vector.load %arg1[%c0, %c0_0] : memref<8x32xbf16, #tpu.memory_space<vmem>>, vector<8x32xbf16>
    %c0_1 = arith.constant 0 : index
    %c0_2 = arith.constant 0 : index
    %1 = vector.load %arg2[%c0_1, %c0_2] : memref<32x128xbf16, #tpu.memory_space<vmem>>, vector<32x128xbf16>
    %cst = arith.constant dense<0.000000e+00> : vector<8x128xf32>
    %2 = tpu.matmul %0, %1, %cst {dimension_numbers = #tpu.dot_dimension_numbers<[1], [0], [0], [1], [0, 0, 1, 1], [], []>} : vector<8x32xbf16>, vector<32x128xbf16>, vector<8x128xf32> -> vector<8x128xf32>
    %c0_3 = arith.constant 0 : index
    %c0_4 = arith.constant 0 : index
    %3 = vector.load %arg3[%c0_3, %c0_4] : memref<1x128xf32, #tpu.memory_space<vmem>>, vector<1x128xf32>
    %4 = vector.broadcast %3 : vector<1x128xf32> to vector<8x128xf32>
    %5 = arith.addf %2, %4 : vector<8x128xf32>
    %cst_5 = arith.constant 0.000000e+00 : f32
    %6 = vector.broadcast %cst_5 : f32 to vector<8x128xf32>
    %7 = arith.maximumf %5, %6 : vector<8x128xf32>
    %8 = arith.truncf %7 : vector<8x128xf32> to vector<8x128xbf16>
    %c0_6 = arith.constant 0 : index
    %c0_7 = arith.constant 0 : index
    %9 = vector.load %arg4[%c0_6, %c0_7] : memref<128x128xbf16, #tpu.memory_space<vmem>>, vector<128x128xbf16>
    %cst_8 = arith.constant dense<0.000000e+00> : vector<8x128xf32>
    %10 = tpu.matmul %8, %9, %cst_8 {dimension_numbers = #tpu.dot_dimension_numbers<[1], [0], [0], [1], [0, 0, 1, 1], [], []>} : vector<8x128xbf16>, vector<128x128xbf16>, vector<8x128xf32> -> vector<8x128xf32>
    %c0_9 = arith.constant 0 : index
    %c0_10 = arith.constant 0 : index
    %11 = vector.load %arg5[%c0_9, %c0_10] : memref<1x128xf32, #tpu.memory_space<vmem>>, vector<1x128xf32>
    %12 = vector.broadcast %11 : vector<1x128xf32> to vector<8x128xf32>
    %13 = arith.addf %10, %12 : vector<8x128xf32>
    %c0_11 = arith.constant 0 : index
    %c0_12 = arith.constant 0 : index
    %14 = vector.load %arg6[%c0_11, %c0_12] : memref<8x128xf32, #tpu.memory_space<vmem>>, vector<8x128xf32>
    tpu.vector_store %arg6[%c0_11, %c0_12], %13 {strides = array<i32>} : memref<8x128xf32, #tpu.memory_space<vmem>>, vector<8x128xf32>,
    return
  }
  func.func @transform_0(%arg0: i32) -> (i32, i32) {
    %c0_i32 = arith.constant 0 : i32
    %c0_i32_0 = arith.constant 0 : i32
    return %arg0, %c0_i32 : i32, i32
  }
  func.func @transform_1(%arg0: i32) -> (i32, i32) {
    %c0_i32 = arith.constant 0 : i32
    %c0_i32_0 = arith.constant 0 : i32
    %c0_i32_1 = arith.constant 0 : i32
    return %c0_i32, %c0_i32_0 : i32, i32
  }
  func.func @transform_2(%arg0: i32) -> (i32, i32) {
    %c0_i32 = arith.constant 0 : i32
    %c0_i32_0 = arith.constant 0 : i32
    %c0_i32_1 = arith.constant 0 : i32
    return %c0_i32, %c0_i32_0 : i32, i32
  }
  func.func @transform_3(%arg0: i32) -> (i32, i32) {
    %c0_i32 = arith.constant 0 : i32
    %c0_i32_0 = arith.constant 0 : i32
    %c0_i32_1 = arith.constant 0 : i32
    return %c0_i32, %c0_i32_0 : i32, i32
  }
  func.func @transform_4(%arg0: i32) -> (i32, i32) {
    %c0_i32 = arith.constant 0 : i32
    %c0_i32_0 = arith.constant 0 : i32
    %c0_i32_1 = arith.constant 0 : i32
    return %c0_i32, %c0_i32_0 : i32, i32
  }
  func.func @transform_5(%arg0: i32) -> (i32, i32) {
    %c0_i32 = arith.constant 0 : i32
    %c0_i32_0 = arith.constant 0 : i32
    return %arg0, %c0_i32 : i32, i32
  }
}

</mosaic_0001>

<bundles_post_ra>
// kernel: mlp_forward.1
= control target key start
LH: loop header
LB: loop body
LE: loop exit
PB: predicated region body
PF: predicated region fallthrough
CT: control target
= control target key end

     0   :  { %v306_v1 = vmov 0.0   ;;  %vm307_vm0 = vmmov 0   ;;  %vm46_vm1 = vcmask 261120   ;;  %s381_s0 = inlined_call_operand.vmem [shape: bf16[8,32], index: 0, kind: input, shape index: {}]   ;;  %s382_s1 = inlined_call_operand.vmem [shape: bf16[32,128], index: 1, kind: input, shape index: {}]   ;;  %s383_s2 = inlined_call_operand.vmem [shape: f32[1,128], index: 2, kind: input, shape index: {}]   ;;  %s384_s3 = inlined_call_operand.vmem [shape: bf16[128,128], index: 3, kind: input, shape index: {}]   ;;  %s385_s4 = inlined_call_operand.vmem [shape: f32[1,128], index: 4, kind: input, shape index: {}]   ;;  %s386_s5 = inlined_call_operand.hbm [shape: f32[8,128], index: 5, kind: output, shape index: {}]  }
   0x1   :  { %v274_v0 = vld [vmem:[%s382_s1 + $0x8] sm:$0xff]   ;;  %243 = vmatprep.subr.bf16.mxu0 %v306_v1  ;;  %251 = vmatprep.subr.bf16.mxu1 %v306_v1  ;;  %v275_v2 = vld [vmem:[%s382_s1] sm:$0xff]   ;;  %v276_v3 = vld [vmem:[%s384_s3 + $0x38] sm:$0xff]  }
   0x2   :  { %244 = vmatpush3.bf16.msra.mxu0 %v274_v0  ;;  %247 = vmatprep.mubr.msk.bf16.mxu0 %vm307_vm0, %v306_v1  ;;  %v277_v4 = vld [vmem:[%s384_s3 + $0x30] sm:$0xff]   ;;  %v22_v5 = vld [vmem:[%s381_s0] sm:$0xf]  ;;  %v278_v6 = vld [vmem:[%s384_s3 + $0x28] sm:$0xff]  }
   0x3   :  { %245 = vmatprep.subr.bf16.mxu0 %v306_v1  ;;  %267 = vmatprep.mubr.msk.bf16.mxu1 %vm307_vm0, %v306_v1 }
   0x4   :  { %252 = vmatpush3.bf16.msra.mxu1 %v276_v3 }
   0x5   :  { %253 = vmatprep.subr.bf16.mxu1 %v306_v1 }
   0x6   :  { %246 = vmatpush3.bf16.msra.mxu0 %v275_v2 }
   0x8   :  { %254 = vmatpush3.bf16.msra.mxu1 %v277_v4 }
   0x9   :  { %248 = vmatmul.mubr.msk.bf16.vlgmr.msra.gmra.mxu0 %vm46_vm1, %v22_v5  ;;  %255 = vmatprep.subr.bf16.mxu1 %v306_v1 }
   0xa   :  { %10 = vsyncpa [#allocation3], 0  ;;  %v279_v7 = vld [vmem:[%s384_s3 + $0x20] sm:$0xff]   ;;  %v280_v8 = vld [vmem:[%s384_s3 + $0x18] sm:$0xff]   ;;  %s308_s17 = smov [#allocation2]  }
   0xb   :  { %v281_v9 = vld [vmem:[%s384_s3 + $0x10] sm:$0xff]   ;;  %v282_v10 = vld [vmem:[%s384_s3 + $0x8] sm:$0xff]   ;;  %v283_v11 = vld [vmem:[%s384_s3] sm:$0xff]   ;;  %s210_s18 = sshll.u32 %s308_s17, 4  ;;  %s211_s18 = int_to_ptr.vmem [resolvable:$true] %s210_s18 }
   0xc   :  { %256 = vmatpush3.bf16.msra.mxu1 %v278_v6  ;;  %v218_v12 = vld [vmem:[%s383_s2] ss:$0 sm:$0xff]  ;;  %s284_s2 = scalar_lea.vmem %s211_s18, 128  ;;  %p289_p1 = scmp.lt.s32.totalorder %s211_s18, %s211_s18 }
   0xd   :  { %257 = vmatprep.subr.bf16.mxu1 %v306_v1  ;;  %v222_v20 = vld [vmem:[%s385_s4] ss:$0 sm:$0xff]  ;;  %p285_p0 = scmp.ne.s32.totalorder %s211_s18, %s284_s2  ;;  %p290_p2 = scmp.lt.s32.totalorder %s284_s2, %s284_s2 }
   0xf   :  { %p291_p3 = por %p290_p2, %p289_p1 }
  0x10   :  { %258 = vmatpush3.bf16.msra.mxu1 %v279_v7 }
  0x11   :  { %259 = vmatprep.subr.bf16.mxu1 %v306_v1  ;;  %p292_p4 = pnand %p291_p3, %p285_p0 }
  0x14   :  { %260 = vmatpush3.bf16.msra.mxu1 %v280_v8 }
  0x15   :  { %261 = vmatprep.subr.bf16.mxu1 %v306_v1 }
  0x18   :  { %262 = vmatpush3.bf16.msra.mxu1 %v281_v9 }
  0x19   :  { %263 = vmatprep.subr.bf16.mxu1 %v306_v1 }
  0x1c   :  { %264 = vmatpush3.bf16.msra.mxu1 %v282_v10 }
  0x1d   :  { %265 = vmatprep.subr.bf16.mxu1 %v306_v1 }
  0x20   :  { %266 = vmatpush3.bf16.msra.mxu1 %v283_v11 }
  0xc9   :  { %v84_v13 = vpop.f32.mrf.mxu0 }
  0xca   :  { %v85_v14 = vadd.f32 %v218_v12, %v84_v13 }
  0xcb   :  { %v249_v15 = vpop.f32.mrf.mxu0 }
  0xcc   :  { %v90_v16 = vmax.f32 %v85_v14, 0.0 }
  0xcd   :  { %v87_v17 = vpop.f32.mrf.mxu0 }
  0xce   :  { %v91_v18 = vpack.c.bf16 %v90_v16, %v90_v16 }
  0xcf   :  { %v250_v19 = vpop.f32.mrf.mxu0 }
  0xd0   :  { %268 = vmatmul.mubr.bf16.vlgmr.msra.gmra.mxu1 %v91_v18 }
 0x190   :  { %v197_v21 = vpop.f32.mrf.mxu1 }
 0x191   :  { %v198_v22 = vadd.f32 %v222_v20, %v197_v21 }
 0x192   :  { %v269_v23 = vpop.f32.mrf.mxu1 }
 0x193   :  { %203 = vst [vmem:[#allocation2] sm:$0xff] %v198_v22 }
 0x194   :  { %v200_v24 = vpop.f32.mrf.mxu1 }
 0x195   :  { %295 = shalt.err (!%p292_p4)
}
 0x196   :  { %213 = dma.vmem_to_hbm [thread:$0]  %s211_s18, 128, %s386_s5, [#allocation3]   ;;  %v270_v25 = vpop.f32.mrf.mxu1 }
 0x197   :  { %304 = dma.done.wait [#allocation3], 128  }
 0x198   :  { %305 = vsyncadd [#allocation3], 4294967168 }
 0x199   :  { %217 = vsyncpa [#allocation3], 1 }

</bundles_post_ra>
